<compile_context>
chip_gen: v6e
topology: v6e:2x2x1
jax: 0.10.0
libtpu: 0.0.40
codegen_flags: <defaults>
</compile_context>

<pallas_src>
import functools

import jax
import jax.numpy as jnp
from jax.experimental import pallas as pl
from jax.experimental.pallas import tpu as pltpu

HIDDEN = 128      # "connection_size" in the PyTorch DQN
LANE = 128        # TPU lane width
MAX_TILE_B = 2048  # largest batch tile (VMEM cost ~2.5 MB double-buffered)


def _round_up(x, mult):
    return ((x + mult - 1) // mult) * mult


# --------------------------------------------------------------------------- #
# Kernels
# --------------------------------------------------------------------------- #
def _mlp_q_f32(x_ref, w1_ref, b1_ref, w2_ref, b2_ref, w3_ref, b3_ref):
    """Fused 3-layer MLP body for one batch tile; returns f32 (tile_b, m_pad)."""
    cdt = w1_ref.dtype  # MXU input dtype (f32 or bf16); accumulation is f32
    h = jnp.dot(x_ref[...], w1_ref[...], preferred_element_type=jnp.float32) + b1_ref[...]
    h = jnp.maximum(h, 0.0).astype(cdt)
    h = jnp.dot(h, w2_ref[...], preferred_element_type=jnp.float32) + b2_ref[...]
    h = jnp.maximum(h, 0.0).astype(cdt)
    return jnp.dot(h, w3_ref[...], preferred_element_type=jnp.float32) + b3_ref[...]


def dqn_mlp_kernel(x_ref, w1_ref, b1_ref, w2_ref, b2_ref, w3_ref, b3_ref, o_ref):
    q = _mlp_q_f32(x_ref, w1_ref, b1_ref, w2_ref, b2_ref, w3_ref, b3_ref)
    o_ref[...] = q.astype(o_ref.dtype)


def dqn_greedy_kernel(x_ref, w1_ref, b1_ref, w2_ref, b2_ref, w3_ref, b3_ref,
                      a_ref, *, m):
    """Q-values + argmax over the m real action columns, fused in one kernel."""
    q = _mlp_q_f32(x_ref, w1_ref, b1_ref, w2_ref, b2_ref, w3_ref, b3_ref)
    lane = jax.lax.broadcasted_iota(jnp.int32, q.shape, 1)
    qv = jnp.where(lane < m, q, -jnp.inf)                 # mask padded columns
    qmax = jnp.max(qv, axis=-1, keepdims=True)
    # first index attaining the max (matches argmax tie-breaking)
    idx = jnp.min(jnp.where(qv == qmax, lane, q.shape[-1]), axis=-1, keepdims=True)
    a_ref[...] = jnp.broadcast_to(idx, a_ref.shape)       # lane-dense int32 store


# --------------------------------------------------------------------------- #
# Wrapper plumbing
# --------------------------------------------------------------------------- #
def _prep(x, params, tile_b, compute_dtype):
    """Pad/cast inputs minimally and build specs shared by both kernels."""
    w1, b1, w2, b2, w3, b3 = (params[k] for k in ("w1", "b1", "w2", "b2", "w3", "b3"))
    B, n = x.shape
    m = w3.shape[1]

    # Lane-dense last layer: pad output columns to a multiple of 128 (weights
    # are tiny, so this is a one-time, negligible pad).
    m_pad = _round_up(m, LANE)
    if m_pad != m:
        w3 = jnp.pad(w3, ((0, 0), (0, m_pad - m)))
        b3 = jnp.pad(b3, ((0, 0), (0, m_pad - m)))

    # Compute dtype: default to x.dtype so no extra cast pass is emitted when
    # the caller already supplies x in the desired dtype (e.g. bf16).
    cdt = jnp.dtype(x.dtype if compute_dtype is None else compute_dtype)
    if x.dtype != cdt:
        x = x.astype(cdt)
    w1, w2, w3 = (w.astype(cdt) for w in (w1, w2, w3))    # biases stay f32

    # Pad B only to the sublane granule (8 rows f32, 16 rows bf16), NOT to a
    # full tile multiple; Pallas handles the partial last block.
    granule = max(8, 32 // cdt.itemsize)
    b_pad = _round_up(B, granule)
    if b_pad != B:
        x = jnp.pad(x, ((0, b_pad - B), (0, 0)))

    # Tile selection: big tiles (amortize per-step overhead) but aim for >=2
    # tiles so both v7x TensorCores get work on mid/large batches.
    if tile_b is None:
        tile_b = max(128, min(MAX_TILE_B, _round_up(pl.cdiv(b_pad, 2), 128)))
    tile_b = _round_up(min(tile_b, b_pad), granule)
    grid = (pl.cdiv(b_pad, tile_b),)

    def resident(shape):
        # Constant index_map -> block stays resident in VMEM across all steps.
        return pl.BlockSpec(shape, lambda i: (0, 0))

    in_specs = [
        pl.BlockSpec((tile_b, n), lambda i: (i, 0)),      # x: one tile per step
        resident((n, HIDDEN)),                            # w1
        resident((1, HIDDEN)),                            # b1
        resident((HIDDEN, HIDDEN)),                       # w2
        resident((1, HIDDEN)),                            # b2
        resident((HIDDEN, m_pad)),                        # w3 (lane-padded)
        resident((1, m_pad)),                             # b3 (lane-padded)
    ]
    args = (x, w1, b1, w2, b2, w3, b3)
    return args, in_specs, B, n, m, m_pad, b_pad, tile_b, grid, cdt


def _weight_bytes(n, m_pad, itemsize):
    return ((n * HIDDEN + HIDDEN * HIDDEN + HIDDEN * m_pad) * itemsize
            + (2 * HIDDEN + m_pad) * 4)


@functools.partial(jax.jit, static_argnames=("tile_b", "compute_dtype", "out_dtype"))
def dqn_forward(x, params, *, tile_b=None, compute_dtype=None, out_dtype=None):
    """DQN forward pass. x: (B, n). Returns Q-values (B, m).

    compute_dtype defaults to x.dtype; bf16 is recommended on v5e/v6e/v7x
    (MXU-native, halves streamed-activation bytes) with f32 accumulation.
    out_dtype defaults to compute_dtype (bf16 Q-values halve the dominant
    HBM writeback stream); pass jnp.float32 to force an f32 output.
    """
    args, in_specs, B, n, m, m_pad, b_pad, tile_b, grid, cdt = _prep(
        x, params, tile_b, compute_dtype)
    odt = jnp.dtype(cdt if out_dtype is None else out_dtype)

    flops = 2 * B * (n * HIDDEN + HIDDEN * HIDDEN + HIDDEN * m_pad)
    bytes_accessed = int(B * n * cdt.itemsize + B * m_pad * odt.itemsize
                         + _weight_bytes(n, m_pad, cdt.itemsize))

    out = pl.pallas_call(
        dqn_mlp_kernel,
        out_shape=jax.ShapeDtypeStruct((b_pad, m_pad), odt),
        grid_spec=pltpu.PrefetchScalarGridSpec(
            num_scalar_prefetch=0,
            grid=grid,
            in_specs=in_specs,
            out_specs=pl.BlockSpec((tile_b, m_pad), lambda i: (i, 0)),
        ),
        compiler_params=pltpu.CompilerParams(
            dimension_semantics=("parallel",),   # shard batch tiles across TCs
        ),
        cost_estimate=pl.CostEstimate(
            flops=flops, transcendentals=0, bytes_accessed=bytes_accessed),
    )(*args)

    return out[:B, :m]


@functools.partial(jax.jit, static_argnames=("tile_b", "compute_dtype"))
def dqn_greedy_actions(x, params, *, tile_b=None, compute_dtype=None):
    """Fused forward + argmax over actions. x: (B, n) -> int32 actions (B,)."""
    args, in_specs, B, n, m, m_pad, b_pad, tile_b, grid, cdt = _prep(
        x, params, tile_b, compute_dtype)

    flops = 2 * B * (n * HIDDEN + HIDDEN * HIDDEN + HIDDEN * m_pad)
    bytes_accessed = int(B * n * cdt.itemsize + B * LANE * 4
                         + _weight_bytes(n, m_pad, cdt.itemsize))

    out = pl.pallas_call(
        functools.partial(dqn_greedy_kernel, m=m),
        out_shape=jax.ShapeDtypeStruct((b_pad, LANE), jnp.int32),
        grid_spec=pltpu.PrefetchScalarGridSpec(
            num_scalar_prefetch=0,
            grid=grid,
            in_specs=in_specs,
            out_specs=pl.BlockSpec((tile_b, LANE), lambda i: (i, 0)),
        ),
        compiler_params=pltpu.CompilerParams(
            dimension_semantics=("parallel",),
        ),
        cost_estimate=pl.CostEstimate(
            flops=flops, transcendentals=0, bytes_accessed=bytes_accessed),
    )(*args)

    return out[:B, 0]


# --------------------------------------------------------------------------- #
# Reference & init (matching nn.Linear defaults of DQN(n, m, ...))
# --------------------------------------------------------------------------- #
def init_params(key, n, m):
    ks = jax.random.split(key, 6)

    def linear(kw, kb, fan_in, fan_out):
        bound = 1.0 / jnp.sqrt(fan_in)
        w = jax.random.uniform(kw, (fan_in, fan_out), jnp.float32, -bound, bound)
        b = jax.random.uniform(kb, (1, fan_out), jnp.float32, -bound, bound)
        return w, b

    w1, b1 = linear(ks[0], ks[1], n, HIDDEN)
    w2, b2 = linear(ks[2], ks[3], HIDDEN, HIDDEN)
    w3, b3 = linear(ks[4], ks[5], HIDDEN, m)
    return {"w1": w1, "b1": b1, "w2": w2, "b2": b2, "w3": w3, "b3": b3}


def reference_forward(x, p):
    h1 = jnp.maximum(x @ p["w1"] + p["b1"], 0.0)
    h2 = jnp.maximum(h1 @ p["w2"] + p["b2"], 0.0)
    return h2 @ p["w3"] + p["b3"]


# TODO(synk): epsilon-greedy random-action fallback and save()/load() are
# host-side training utilities, not part of the forward pass.

if __name__ == "__main__":
    key = jax.random.PRNGKey(0)
    k_x, k_p, k_x2 = jax.random.split(key, 3)

    n, m = 16, 4  # small state/action space sizes
    params = init_params(k_p, n, m)

    # Small batch (tile clamps to the 8-row sublane granule) — exact f32 check.
    x_small = jax.random.normal(k_x, (2, n), dtype=jnp.float32)
    ref_small = reference_forward(x_small, params)
    out_small = jax.block_until_ready(dqn_forward(x_small, params))
    assert out_small.shape == (2, m)
    assert jnp.allclose(out_small, ref_small, atol=1e-4, rtol=1e-4)

    # Non-tile-multiple batch: 2-step grid with a partial last block — exact.
    x_big = jax.random.normal(k_x2, (200, n), dtype=jnp.float32)
    ref_big = reference_forward(x_big, params)
    out_big = jax.block_until_ready(dqn_forward(x_big, params))
    assert out_big.shape == (200, m)
    assert jnp.allclose(out_big, ref_big, atol=1e-4, rtol=1e-4)

    # bf16 MXU + bf16 writeback path (recommended on v5e/v6e/v7x).
    out_bf16 = jax.block_until_ready(
        dqn_forward(x_big, params, compute_dtype=jnp.bfloat16))
    assert out_bf16.shape == (200, m)
    assert out_bf16.dtype == jnp.bfloat16
    assert jnp.allclose(out_bf16.astype(jnp.float32), ref_big, atol=1e-1, rtol=1e-1)

    # Fused greedy-action kernel (no padded Q-slab writeback) — exact vs argmax.
    acts = jax.block_until_ready(dqn_greedy_actions(x_big, params))
    assert acts.shape == (200,)
    assert jnp.array_equal(acts, jnp.argmax(ref_big, axis=-1).astype(jnp.int32))

    print("KERNEL_OK")
</pallas_src>

<mosaic_0001>
module attributes {stable_mosaic.version = 11 : i64} {
  func.func @dqn_mlp_kernel(%arg0: i32, %arg1: memref<8x16xf32, #tpu.memory_space<vmem>>, %arg2: memref<16x128xf32, #tpu.memory_space<vmem>>, %arg3: memref<1x128xf32, #tpu.memory_space<vmem>>, %arg4: memref<128x128xf32, #tpu.memory_space<vmem>>, %arg5: memref<1x128xf32, #tpu.memory_space<vmem>>, %arg6: memref<128x128xf32, #tpu.memory_space<vmem>>, %arg7: memref<1x128xf32, #tpu.memory_space<vmem>>, %arg8: memref<8x128xf32, #tpu.memory_space<vmem>>) attributes {dimension_semantics = [#tpu.dimension_semantics<parallel>], iteration_bounds = array<i64: 1>, scalar_prefetch = 0 : i64, scratch_operands = 0 : i64, tpu.core_type = #tpu.core_type<tc>, window_params = [{transform_indices = @transform_0, window_bounds = array<i64: 8, 16>}, {pipeline_mode = #tpu.pipeline_mode<synchronous>, transform_indices = @transform_1, window_bounds = array<i64: 16, 128>}, {pipeline_mode = #tpu.pipeline_mode<synchronous>, transform_indices = @transform_2, window_bounds = array<i64: 1, 128>}, {pipeline_mode = #tpu.pipeline_mode<synchronous>, transform_indices = @transform_3, window_bounds = array<i64: 128, 128>}, {pipeline_mode = #tpu.pipeline_mode<synchronous>, transform_indices = @transform_4, window_bounds = array<i64: 1, 128>}, {pipeline_mode = #tpu.pipeline_mode<synchronous>, transform_indices = @transform_5, window_bounds = array<i64: 128, 128>}, {pipeline_mode = #tpu.pipeline_mode<synchronous>, transform_indices = @transform_6, window_bounds = array<i64: 1, 128>}, {transform_indices = @transform_7, window_bounds = array<i64: 8, 128>}]} {
    %c0 = arith.constant 0 : index
    %c0_0 = arith.constant 0 : index
    %0 = vector.load %arg1[%c0, %c0_0] : memref<8x16xf32, #tpu.memory_space<vmem>>, vector<8x16xf32>
    %c0_1 = arith.constant 0 : index
    %c0_2 = arith.constant 0 : index
    %1 = vector.load %arg2[%c0_1, %c0_2] : memref<16x128xf32, #tpu.memory_space<vmem>>, vector<16x128xf32>
    %cst = arith.constant dense<0.000000e+00> : vector<8x128xf32>
    %2 = tpu.matmul %0, %1, %cst {dimension_numbers = #tpu.dot_dimension_numbers<[1], [0], [0], [1], [0, 0, 1, 1], [], []>} : vector<8x16xf32>, vector<16x128xf32>, vector<8x128xf32> -> vector<8x128xf32>
    %c0_3 = arith.constant 0 : index
    %c0_4 = arith.constant 0 : index
    %3 = vector.load %arg3[%c0_3, %c0_4] : memref<1x128xf32, #tpu.memory_space<vmem>>, vector<1x128xf32>
    %4 = vector.broadcast %3 : vector<1x128xf32> to vector<8x128xf32>
    %5 = arith.addf %2, %4 : vector<8x128xf32>
    %cst_5 = arith.constant 0.000000e+00 : f32
    %6 = vector.broadcast %cst_5 : f32 to vector<8x128xf32>
    %7 = arith.maximumf %5, %6 : vector<8x128xf32>
    %c0_6 = arith.constant 0 : index
    %c0_7 = arith.constant 0 : index
    %8 = vector.load %arg4[%c0_6, %c0_7] : memref<128x128xf32, #tpu.memory_space<vmem>>, vector<128x128xf32>
    %cst_8 = arith.constant dense<0.000000e+00> : vector<8x128xf32>
    %9 = tpu.matmul %7, %8, %cst_8 {dimension_numbers = #tpu.dot_dimension_numbers<[1], [0], [0], [1], [0, 0, 1, 1], [], []>} : vector<8x128xf32>, vector<128x128xf32>, vector<8x128xf32> -> vector<8x128xf32>
    %c0_9 = arith.constant 0 : index
    %c0_10 = arith.constant 0 : index
    %10 = vector.load %arg5[%c0_9, %c0_10] : memref<1x128xf32, #tpu.memory_space<vmem>>, vector<1x128xf32>
    %11 = vector.broadcast %10 : vector<1x128xf32> to vector<8x128xf32>
    %12 = arith.addf %9, %11 : vector<8x128xf32>
    %cst_11 = arith.constant 0.000000e+00 : f32
    %13 = vector.broadcast %cst_11 : f32 to vector<8x128xf32>
    %14 = arith.maximumf %12, %13 : vector<8x128xf32>
    %c0_12 = arith.constant 0 : index
    %c0_13 = arith.constant 0 : index
    %15 = vector.load %arg6[%c0_12, %c0_13] : memref<128x128xf32, #tpu.memory_space<vmem>>, vector<128x128xf32>
    %cst_14 = arith.constant dense<0.000000e+00> : vector<8x128xf32>
    %16 = tpu.matmul %14, %15, %cst_14 {dimension_numbers = #tpu.dot_dimension_numbers<[1], [0], [0], [1], [0, 0, 1, 1], [], []>} : vector<8x128xf32>, vector<128x128xf32>, vector<8x128xf32> -> vector<8x128xf32>
    %c0_15 = arith.constant 0 : index
    %c0_16 = arith.constant 0 : index
    %17 = vector.load %arg7[%c0_15, %c0_16] : memref<1x128xf32, #tpu.memory_space<vmem>>, vector<1x128xf32>
    %18 = vector.broadcast %17 : vector<1x128xf32> to vector<8x128xf32>
    %19 = arith.addf %16, %18 : vector<8x128xf32>
    %c0_17 = arith.constant 0 : index
    %c0_18 = arith.constant 0 : index
    %20 = vector.load %arg8[%c0_17, %c0_18] : memref<8x128xf32, #tpu.memory_space<vmem>>, vector<8x128xf32>
    tpu.vector_store %arg8[%c0_17, %c0_18], %19 {strides = array<i32>} : memref<8x128xf32, #tpu.memory_space<vmem>>, vector<8x128xf32>,
    return
  }
  func.func @transform_0(%arg0: i32) -> (i32, i32) {
    %c0_i32 = arith.constant 0 : i32
    %c0_i32_0 = arith.constant 0 : i32
    return %arg0, %c0_i32 : i32, i32
  }
  func.func @transform_1(%arg0: i32) -> (i32, i32) {
    %c0_i32 = arith.constant 0 : i32
    %c0_i32_0 = arith.constant 0 : i32
    %c0_i32_1 = arith.constant 0 : i32
    return %c0_i32, %c0_i32_0 : i32, i32
  }
  func.func @transform_2(%arg0: i32) -> (i32, i32) {
    %c0_i32 = arith.constant 0 : i32
    %c0_i32_0 = arith.constant 0 : i32
    %c0_i32_1 = arith.constant 0 : i32
    return %c0_i32, %c0_i32_0 : i32, i32
  }
  func.func @transform_3(%arg0: i32) -> (i32, i32) {
    %c0_i32 = arith.constant 0 : i32
    %c0_i32_0 = arith.constant 0 : i32
    %c0_i32_1 = arith.constant 0 : i32
    return %c0_i32, %c0_i32_0 : i32, i32
  }
  func.func @transform_4(%arg0: i32) -> (i32, i32) {
    %c0_i32 = arith.constant 0 : i32
    %c0_i32_0 = arith.constant 0 : i32
    %c0_i32_1 = arith.constant 0 : i32
    return %c0_i32, %c0_i32_0 : i32, i32
  }
  func.func @transform_5(%arg0: i32) -> (i32, i32) {
    %c0_i32 = arith.constant 0 : i32
    %c0_i32_0 = arith.constant 0 : i32
    %c0_i32_1 = arith.constant 0 : i32
    return %c0_i32, %c0_i32_0 : i32, i32
  }
  func.func @transform_6(%arg0: i32) -> (i32, i32) {
    %c0_i32 = arith.constant 0 : i32
    %c0_i32_0 = arith.constant 0 : i32
    %c0_i32_1 = arith.constant 0 : i32
    return %c0_i32, %c0_i32_0 : i32, i32
  }
  func.func @transform_7(%arg0: i32) -> (i32, i32) {
    %c0_i32 = arith.constant 0 : i32
    %c0_i32_0 = arith.constant 0 : i32
    return %arg0, %c0_i32 : i32, i32
  }
}

</mosaic_0001>

<bundles_post_ra>
// kernel: dqn_forward.1
= control target key start
LH: loop header
LB: loop body
LE: loop exit
PB: predicated region body
PF: predicated region fallthrough
CT: control target
= control target key end

     0   :  { %v423_v0 = vmov 0.0   ;;  %vm424_vm0 = vmmov 0   ;;  %vm36_vm1 = vcmask 130048   ;;  %s622_s1 = inlined_call_operand.vmem [shape: f32[16,128], index: 1, kind: input, shape index: {}]   ;;  %s623_s0 = inlined_call_operand.vmem [shape: f32[8,16], index: 0, kind: input, shape index: {}]   ;;  %s624_s3 = inlined_call_operand.vmem [shape: f32[128,128], index: 3, kind: input, shape index: {}]   ;;  %s625_s5 = inlined_call_operand.vmem [shape: f32[128,128], index: 5, kind: input, shape index: {}]   ;;  %s626_s2 = inlined_call_operand.vmem [shape: f32[1,128], index: 2, kind: input, shape index: {}]   ;;  %s627_s4 = inlined_call_operand.vmem [shape: f32[1,128], index: 4, kind: input, shape index: {}]   ;;  %s628_s6 = inlined_call_operand.vmem [shape: f32[1,128], index: 6, kind: input, shape index: {}]   ;;  %s629_s7 = inlined_call_operand.vmem [shape: f32[8,128], index: 7, kind: output, shape index: {}]  }
   0x1   :  { %344 = vmatprep.subr.mxu0 %v423_v0  ;;  %v28_v1 = vld [vmem:[%s622_s1 + $0x8] sm:$0xff]  ;;  %v27_v2 = vld [vmem:[%s622_s1] sm:$0xff]  ;;  %348 = vmatprep.mubr.msk.f32.mxu0 %vm424_vm0, %v423_v0  ;;  %v126_v4 = vld [vmem:[%s624_s3 + $0x78] sm:$0xff] }
   0x2   :  { %345 = vmatpush3.msra.mxu0 %v28_v1  ;;  %v26_v3 = vld [vmem:[%s623_s0] sm:$0xff]  ;;  %351 = vmatprep.subr.mxu1 %v423_v0  ;;  %v125_v5 = vld [vmem:[%s624_s3 + $0x70] sm:$0xff]  ;;  %v124_v6 = vld [vmem:[%s624_s3 + $0x68] sm:$0xff] }
   0x3   :  { %346 = vmatprep.subr.mxu0 %v423_v0  ;;  %352 = vmatpush3.msra.mxu1 %v126_v4  ;;  %v123_v7 = vld [vmem:[%s624_s3 + $0x60] sm:$0xff]  ;;  %v122_v8 = vld [vmem:[%s624_s3 + $0x58] sm:$0xff]  ;;  %v121_v9 = vld [vmem:[%s624_s3 + $0x50] sm:$0xff] }
   0x4   :  { %347 = vmatpush3.msra.mxu0 %v27_v2  ;;  %353 = vmatprep.subr.mxu1 %v423_v0  ;;  %v120_v10 = vld [vmem:[%s624_s3 + $0x48] sm:$0xff]  ;;  %v119_v11 = vld [vmem:[%s624_s3 + $0x40] sm:$0xff]  ;;  %v118_v12 = vld [vmem:[%s624_s3 + $0x38] sm:$0xff] }
   0x5   :  { %349 = vmatmul.mubr.msk.f32.vlgmr.msra.gmra.mxu0 %vm36_vm1, %v26_v3  ;;  %354 = vmatpush3.msra.mxu1 %v125_v5  ;;  %v117_v13 = vld [vmem:[%s624_s3 + $0x30] sm:$0xff]  ;;  %v116_v14 = vld [vmem:[%s624_s3 + $0x28] sm:$0xff]  ;;  %v115_v15 = vld [vmem:[%s624_s3 + $0x20] sm:$0xff] }
   0x6   :  { %355 = vmatprep.subr.mxu1 %v423_v0  ;;  %383 = vmatprep.mubr.msk.f32.mxu1 %vm424_vm0, %v423_v0  ;;  %v114_v16 = vld [vmem:[%s624_s3 + $0x18] sm:$0xff]  ;;  %v113_v17 = vld [vmem:[%s624_s3 + $0x10] sm:$0xff]  ;;  %v112_v18 = vld [vmem:[%s624_s3 + $0x8] sm:$0xff] }
   0x7   :  { %356 = vmatpush3.msra.mxu1 %v124_v6  ;;  %386 = vmatprep.subr.mxu0 %v423_v0  ;;  %v111_v19 = vld [vmem:[%s624_s3] sm:$0xff]  ;;  %v220_v20 = vld [vmem:[%s625_s5 + $0x78] sm:$0xff]  ;;  %v219_v21 = vld [vmem:[%s625_s5 + $0x70] sm:$0xff] }
   0x8   :  { %357 = vmatprep.subr.mxu1 %v423_v0  ;;  %418 = vmatprep.mubr.msk.f32.mxu0 %vm424_vm0, %v423_v0  ;;  %v218_v22 = vld [vmem:[%s625_s5 + $0x68] sm:$0xff]  ;;  %v217_v23 = vld [vmem:[%s625_s5 + $0x60] sm:$0xff]  ;;  %v216_v24 = vld [vmem:[%s625_s5 + $0x58] sm:$0xff] }
   0x9   :  { %358 = vmatpush3.msra.mxu1 %v123_v7  ;;  %387 = vmatpush3.msra.mxu0 %v220_v20  ;;  %v215_v25 = vld [vmem:[%s625_s5 + $0x50] sm:$0xff]  ;;  %v214_v26 = vld [vmem:[%s625_s5 + $0x48] sm:$0xff]  ;;  %v213_v27 = vld [vmem:[%s625_s5 + $0x40] sm:$0xff] }
   0xa   :  { %359 = vmatprep.subr.mxu1 %v423_v0  ;;  %388 = vmatprep.subr.mxu0 %v423_v0  ;;  %v212_v28 = vld [vmem:[%s625_s5 + $0x38] sm:$0xff]  ;;  %v211_v29 = vld [vmem:[%s625_s5 + $0x30] sm:$0xff]  ;;  %v210_v30 = vld [vmem:[%s625_s5 + $0x28] sm:$0xff] }
   0xb   :  { %360 = vmatpush3.msra.mxu1 %v122_v8  ;;  %389 = vmatpush3.msra.mxu0 %v219_v21  ;;  %v209_v31 = vld [vmem:[%s625_s5 + $0x20] sm:$0xff]  ;;  %v208_v32 = vld [vmem:[%s625_s5 + $0x18] sm:$0xff]  ;;  %v207_v38 = vld [vmem:[%s625_s5 + $0x10] sm:$0xff] }
   0xc   :  { %361 = vmatprep.subr.mxu1 %v423_v0  ;;  %390 = vmatprep.subr.mxu0 %v423_v0  ;;  %v303_v33 = vld [vmem:[%s626_s2] ss:$0 sm:$0xff]  ;;  %v206_v39 = vld [vmem:[%s625_s5 + $0x8] sm:$0xff] }
   0xd   :  { %362 = vmatpush3.msra.mxu1 %v121_v9  ;;  %391 = vmatpush3.msra.mxu0 %v218_v22  ;;  %v205_v40 = vld [vmem:[%s625_s5] sm:$0xff] }
   0xe   :  { %363 = vmatprep.subr.mxu1 %v423_v0  ;;  %392 = vmatprep.subr.mxu0 %v423_v0  ;;  %v305_v41 = vld [vmem:[%s627_s4] ss:$0 sm:$0xff] }
   0xf   :  { %364 = vmatpush3.msra.mxu1 %v120_v10  ;;  %393 = vmatpush3.msra.mxu0 %v217_v23  ;;  %v306_v46 = vld [vmem:[%s628_s6] ss:$0 sm:$0xff] }
  0x10   :  { %365 = vmatprep.subr.mxu1 %v423_v0  ;;  %394 = vmatprep.subr.mxu0 %v423_v0 }
  0x11   :  { %366 = vmatpush3.msra.mxu1 %v119_v11  ;;  %395 = vmatpush3.msra.mxu0 %v216_v24 }
  0x12   :  { %367 = vmatprep.subr.mxu1 %v423_v0  ;;  %396 = vmatprep.subr.mxu0 %v423_v0 }
  0x13   :  { %368 = vmatpush3.msra.mxu1 %v118_v12  ;;  %397 = vmatpush3.msra.mxu0 %v215_v25 }
  0x14   :  { %369 = vmatprep.subr.mxu1 %v423_v0  ;;  %398 = vmatprep.subr.mxu0 %v423_v0 }
  0x15   :  { %370 = vmatpush3.msra.mxu1 %v117_v13  ;;  %399 = vmatpush3.msra.mxu0 %v214_v26 }
  0x16   :  { %371 = vmatprep.subr.mxu1 %v423_v0  ;;  %400 = vmatprep.subr.mxu0 %v423_v0 }
  0x17   :  { %372 = vmatpush3.msra.mxu1 %v116_v14  ;;  %401 = vmatpush3.msra.mxu0 %v213_v27 }
  0x18   :  { %373 = vmatprep.subr.mxu1 %v423_v0  ;;  %402 = vmatprep.subr.mxu0 %v423_v0 }
  0x19   :  { %374 = vmatpush3.msra.mxu1 %v115_v15  ;;  %403 = vmatpush3.msra.mxu0 %v212_v28 }
  0x1a   :  { %375 = vmatprep.subr.mxu1 %v423_v0  ;;  %404 = vmatprep.subr.mxu0 %v423_v0 }
  0x1b   :  { %376 = vmatpush3.msra.mxu1 %v114_v16  ;;  %405 = vmatpush3.msra.mxu0 %v211_v29 }
  0x1c   :  { %377 = vmatprep.subr.mxu1 %v423_v0  ;;  %406 = vmatprep.subr.mxu0 %v423_v0 }
  0x1d   :  { %378 = vmatpush3.msra.mxu1 %v113_v17  ;;  %407 = vmatpush3.msra.mxu0 %v210_v30 }
  0x1e   :  { %379 = vmatprep.subr.mxu1 %v423_v0  ;;  %408 = vmatprep.subr.mxu0 %v423_v0 }
  0x1f   :  { %380 = vmatpush3.msra.mxu1 %v112_v18  ;;  %409 = vmatpush3.msra.mxu0 %v209_v31 }
  0x20   :  { %381 = vmatprep.subr.mxu1 %v423_v0  ;;  %410 = vmatprep.subr.mxu0 %v423_v0 }
  0x21   :  { %382 = vmatpush3.msra.mxu1 %v111_v19  ;;  %411 = vmatpush3.msra.mxu0 %v208_v32 }
  0x22   :  { %412 = vmatprep.subr.mxu0 %v423_v0 }
  0x23   :  { %413 = vmatpush3.msra.mxu0 %v207_v38 }
  0x24   :  { %414 = vmatprep.subr.mxu0 %v423_v0 }
  0x25   :  { %415 = vmatpush3.msra.mxu0 %v206_v39 }
  0x26   :  { %416 = vmatprep.subr.mxu0 %v423_v0 }
  0x27   :  { %417 = vmatpush3.msra.mxu0 %v205_v40 }
  0xc5   :  { %v106_v34 = vpop.f32.mrf.mxu0 }
  0xc6   :  { %v107_v35 = vadd.f32 %v303_v33, %v106_v34 }
  0xc7   :  { %v350_v36 = vpop.f32.mrf.mxu0 }
  0xc8   :  { %v110_v37 = vmax.f32 %v107_v35, 0.0 }
  0xca   :  { %384 = vmatmul.mubr.f32.vlgmr.msra.gmra.mxu1 %v110_v37 }
 0x18a   :  { %v200_v42 = vpop.f32.mrf.mxu1 }
 0x18b   :  { %v201_v43 = vadd.f32 %v305_v41, %v200_v42 }
 0x18c   :  { %v385_v44 = vpop.f32.mrf.mxu1 }
 0x18d   :  { %v204_v45 = vmax.f32 %v201_v43, 0.0 }
 0x18f   :  { %419 = vmatmul.mubr.f32.vlgmr.msra.gmra.mxu0 %v204_v45 }
 0x24f   :  { %v294_v47 = vpop.f32.mrf.mxu0 }
 0x250   :  { %v295_v48 = vadd.f32 %v306_v46, %v294_v47 }
 0x251   :  { %v420_v49 = vpop.f32.mrf.mxu0 }
 0x252   :  { %298 = vst [vmem:[%s629_s7] sm:$0xff] %v295_v48 }

</bundles_post_ra>
